<compile_context>
chip_gen: v7x
topology: tpu7x:2x2x1
jax: 0.10.0
libtpu: 0.0.40
codegen_flags: <defaults>
</compile_context>

<pallas_src>
import numpy as np
import jax
import jax.numpy as jnp
from jax import lax
from jax.experimental import pallas as pl
from jax.experimental.pallas import tpu as pltpu

_LANE = 128
_SUBLANE = 8
_MAX_TILE_ROWS = 2048                     # 1 MiB per f32 operand block
_VMEM_BUDGET = 24 * 1024 * 1024           # conservative double-buffer budget
_VMEM_LIMIT = 32 * 1024 * 1024            # <= default scoped limit on v6e/v7x


def _round_up(n, m):
    return -(-n // m) * m


def _plan_tiles(n_elems, n_streamed):
    """Return (padded_rows, tile_rows) for a flat f32 array of n_elems,
    given the number of large streamed (double-buffered) operands."""
    rows = _round_up(max(n_elems, 1), _LANE) // _LANE
    rows = _round_up(rows, _SUBLANE)
    bytes_per_row = _LANE * 4
    max_rows = _VMEM_BUDGET // (2 * max(n_streamed, 1) * bytes_per_row)
    max_rows = max(_SUBLANE, (max_rows // _SUBLANE) * _SUBLANE)
    tile_r = min(_MAX_TILE_ROWS, max_rows, rows)
    rows_p = _round_up(rows, tile_r)
    return rows_p, tile_r


def _to_lane_dense(flat, rows_p, pad_value):
    """Pad a 1-D f32 array and reshape to (rows_p, 128)."""
    n = flat.shape[0]
    total = rows_p * _LANE
    flat = jnp.pad(flat, (0, total - n), constant_values=pad_value)
    return flat.reshape(rows_p, _LANE)


# ----------------------------- kernels ------------------------------------ #

def _sum_abs_kernel(x_ref, o_ref):
    """Accumulate per-lane partial sums of |x| into a resident (1,128) row."""
    @pl.when(pl.program_id(0) == 0)
    def _():
        o_ref[...] = jnp.zeros_like(o_ref)
    o_ref[...] += jnp.sum(jnp.abs(x_ref[...]), axis=0, keepdims=True)


def _phase_diff_kernel(pr_ref, pi_ref, tr_ref, ti_ref,
                       dr_ref, di_ref, psum_ref):
    """d = exp(i*angle(p)) - exp(i*angle(t))  (z==0 -> 1+0j), emitted as
    (dr, di) slabs, plus per-lane partial sums of |d| (phase loss)."""
    @pl.when(pl.program_id(0) == 0)
    def _():
        psum_ref[...] = jnp.zeros_like(psum_ref)

    pr = pr_ref[...]
    pi = pi_ref[...]
    tr = tr_ref[...]
    ti = ti_ref[...]

    one = jnp.float32(1.0)
    zero = jnp.float32(0.0)

    pm2 = pr * pr + pi * pi
    tm2 = tr * tr + ti * ti
    p_ok = pm2 > zero
    t_ok = tm2 > zero
    p_inv = lax.rsqrt(jnp.where(p_ok, pm2, one))   # EUP; no divide
    t_inv = lax.rsqrt(jnp.where(t_ok, tm2, one))

    dr = jnp.where(p_ok, pr * p_inv, one) - jnp.where(t_ok, tr * t_inv, one)
    di = jnp.where(p_ok, pi * p_inv, zero) - jnp.where(t_ok, ti * t_inv, zero)

    dr_ref[...] = dr
    di_ref[...] = di
    psum_ref[...] += jnp.sum(jnp.sqrt(dr * dr + di * di),
                             axis=0, keepdims=True)


# ----------------------------- wrappers ------------------------------------ #

_COMPILER_PARAMS = pltpu.CompilerParams(
    dimension_semantics=("arbitrary",),
    vmem_limit_bytes=_VMEM_LIMIT,
)


def _mean_abs(x):
    """mean(|x|) via a streaming Pallas reduction."""
    flat = x.astype(jnp.float32).reshape(-1)
    n = flat.shape[0]
    rows_p, tile_r = _plan_tiles(n, n_streamed=1)
    x2 = _to_lane_dense(flat, rows_p, 0.0)          # |0| adds nothing
    s = pl.pallas_call(
        _sum_abs_kernel,
        out_shape=jax.ShapeDtypeStruct((1, _LANE), jnp.float32),
        grid_spec=pltpu.PrefetchScalarGridSpec(
            num_scalar_prefetch=0,
            grid=(rows_p // tile_r,),
            in_specs=[pl.BlockSpec((tile_r, _LANE), lambda i: (i, 0))],
            out_specs=pl.BlockSpec((1, _LANE), lambda i: (0, 0)),
        ),
        compiler_params=_COMPILER_PARAMS,
    )(x2)
    return jnp.sum(s) / jnp.float32(n)


def _phase_diff(pf, tf):
    """Return (d, phase_mean) where d = exp(i*angle(pf)) - exp(i*angle(tf))
    and phase_mean = mean(|d|), for complex spectra pf/tf."""
    spec_shape = pf.shape
    n = int(np.prod(spec_shape))

    pr = jnp.real(pf).astype(jnp.float32).reshape(-1)
    pi = jnp.imag(pf).astype(jnp.float32).reshape(-1)
    tr = jnp.real(tf).astype(jnp.float32).reshape(-1)
    ti = jnp.imag(tf).astype(jnp.float32).reshape(-1)

    # 4 streamed inputs + 2 streamed slab outputs
    rows_p, tile_r = _plan_tiles(n, n_streamed=6)
    # Pad real with 1 and imag with 0: padded entries normalize to exactly
    # 1+0j on both sides, so their difference is 0 and contributes nothing.
    pr2 = _to_lane_dense(pr, rows_p, 1.0)
    pi2 = _to_lane_dense(pi, rows_p, 0.0)
    tr2 = _to_lane_dense(tr, rows_p, 1.0)
    ti2 = _to_lane_dense(ti, rows_p, 0.0)

    tile_spec = pl.BlockSpec((tile_r, _LANE), lambda i: (i, 0))
    acc_spec = pl.BlockSpec((1, _LANE), lambda i: (0, 0))
    slab = jax.ShapeDtypeStruct((rows_p, _LANE), jnp.float32)

    dr2, di2, psum = pl.pallas_call(
        _phase_diff_kernel,
        out_shape=(slab, slab,
                   jax.ShapeDtypeStruct((1, _LANE), jnp.float32)),
        grid_spec=pltpu.PrefetchScalarGridSpec(
            num_scalar_prefetch=0,
            grid=(rows_p // tile_r,),
            in_specs=[tile_spec, tile_spec, tile_spec, tile_spec],
            out_specs=(tile_spec, tile_spec, acc_spec),
        ),
        compiler_params=_COMPILER_PARAMS,
    )(pr2, pi2, tr2, ti2)

    dr = dr2.reshape(-1)[:n].reshape(spec_shape)
    di = di2.reshape(-1)[:n].reshape(spec_shape)
    d = lax.complex(dr, di)
    phase_mean = jnp.sum(psum) / jnp.float32(n)
    return d, phase_mean


def phase3_freq_loss_pallas(pred, target, loss_weight=1.0):
    """pred = (pred1, pred2), each (N,C,H,W) f32; target (N,C,H,W) f32."""
    pred1, pred2 = pred

    # term 1: mean(|pred1|)
    m1 = _mean_abs(pred1)

    # Phase2freqLoss(pred2, target)
    # TODO(synk): 2-D real FFT / inverse FFT have no Pallas TPU primitive;
    # they are computed with jnp.fft in the wrapper (XLA FFT on TPU).
    pf = jnp.fft.rfft2(pred2.astype(jnp.float32))
    tf = jnp.fft.rfft2(target.astype(jnp.float32))

    # d = exp(i*angle(pf)) - exp(i*angle(tf)); phase_mean = mean(|d|)
    d, phase_mean = _phase_diff(pf, tf)

    # By linearity of the FFT: irfft2(p_unit) - irfft2(t_unit) == irfft2(d),
    # so only one inverse FFT is needed.
    diff_spatial = jnp.fft.irfft2(d)
    l1 = _mean_abs(diff_spatial)

    lw = jnp.float32(loss_weight)
    freq2 = (lw * l1 + jnp.float32(0.05) * phase_mean) * lw
    return m1 + freq2


# ----------------------------- reference ----------------------------------- #

def phase3_freq_loss_ref(pred, target, loss_weight=1.0):
    """Pure-JAX mirror of the PyTorch module."""
    pred1, pred2 = pred
    pred_f = jnp.fft.rfft2(pred2)
    tar_f = jnp.fft.rfft2(target)
    p_f = jnp.exp(1j * jnp.angle(pred_f))
    t_f = jnp.exp(1j * jnp.angle(tar_f))
    pred_if = jnp.fft.irfft2(p_f)
    target_if = jnp.fft.irfft2(t_f)
    phase_diff = jnp.abs(p_f - t_f)
    loss = jnp.mean(phase_diff)
    l1 = jnp.mean(jnp.abs(pred_if - target_if))
    freq2 = (loss_weight * l1 + loss * 0.05) * loss_weight
    return jnp.mean(jnp.abs(pred1)) + freq2


if __name__ == "__main__":
    key = jax.random.PRNGKey(0)
    k1, k2, k3 = jax.random.split(key, 3)
    B, C, H, W = 2, 4, 16, 16
    pred1 = jax.random.normal(k1, (B, C, H, W), dtype=jnp.float32)
    pred2 = jax.random.normal(k2, (B, C, H, W), dtype=jnp.float32)
    target = jax.random.normal(k3, (B, C, H, W), dtype=jnp.float32)

    out = phase3_freq_loss_pallas((pred1, pred2), target)
    jax.block_until_ready(out)

    ref = phase3_freq_loss_ref((pred1, pred2), target)
    np.testing.assert_allclose(np.asarray(out), np.asarray(ref),
                               rtol=1e-5, atol=1e-5)
    print("KERNEL_OK")
</pallas_src>

<mosaic_0001>
module attributes {stable_mosaic.version = 11 : i64} {
  func.func @_sum_abs_kernel(%arg0: i32, %arg1: memref<16x128xf32, #tpu.memory_space<vmem>>, %arg2: memref<1x128xf32, #tpu.memory_space<vmem>>) attributes {dimension_semantics = [#tpu.dimension_semantics<arbitrary>], iteration_bounds = array<i64: 1>, scalar_prefetch = 0 : i64, scratch_operands = 0 : i64, tpu.core_type = #tpu.core_type<tc>, window_params = [{transform_indices = @transform_0, window_bounds = array<i64: 16, 128>}, {pipeline_mode = #tpu.pipeline_mode<synchronous>, transform_indices = @transform_1, window_bounds = array<i64: 1, 128>}]} {
    %c0_i32 = arith.constant 0 : i32
    %0 = arith.cmpi eq, %arg0, %c0_i32 : i32
    %1 = arith.extui %0 : i1 to i32
    %c0_i32_0 = arith.constant 0 : i32
    %2 = arith.cmpi ne, %1, %c0_i32_0 : i32
    scf.if %2 {
      %cst_6 = arith.constant 0.000000e+00 : f32
      %10 = vector.broadcast %cst_6 : f32 to vector<1x128xf32>
      %c0_7 = arith.constant 0 : index
      %c0_8 = arith.constant 0 : index
      %11 = vector.load %arg2[%c0_7, %c0_8] : memref<1x128xf32, #tpu.memory_space<vmem>>, vector<1x128xf32>
      tpu.vector_store %arg2[%c0_7, %c0_8], %10 {strides = array<i32>} : memref<1x128xf32, #tpu.memory_space<vmem>>, vector<1x128xf32>,
    } else {
    }
    %c0 = arith.constant 0 : index
    %c0_1 = arith.constant 0 : index
    %3 = vector.load %arg2[%c0, %c0_1] : memref<1x128xf32, #tpu.memory_space<vmem>>, vector<1x128xf32>
    %c0_2 = arith.constant 0 : index
    %c0_3 = arith.constant 0 : index
    %4 = vector.load %arg1[%c0_2, %c0_3] : memref<16x128xf32, #tpu.memory_space<vmem>>, vector<16x128xf32>
    %5 = math.absf %4 : vector<16x128xf32>
    %cst = arith.constant dense<0.000000e+00> : vector<128xf32>
    %6 = vector.multi_reduction <add>, %5, %cst [0] : vector<16x128xf32> to vector<128xf32>
    %7 = vector.shape_cast %6 : vector<128xf32> to vector<1x128xf32>
    %8 = arith.addf %3, %7 : vector<1x128xf32>
    %c0_4 = arith.constant 0 : index
    %c0_5 = arith.constant 0 : index
    %9 = vector.load %arg2[%c0_4, %c0_5] : memref<1x128xf32, #tpu.memory_space<vmem>>, vector<1x128xf32>
    tpu.vector_store %arg2[%c0_4, %c0_5], %8 {strides = array<i32>} : memref<1x128xf32, #tpu.memory_space<vmem>>, vector<1x128xf32>,
    return
  }
  func.func @transform_0(%arg0: i32) -> (i32, i32) {
    %c0_i32 = arith.constant 0 : i32
    %c0_i32_0 = arith.constant 0 : i32
    return %arg0, %c0_i32 : i32, i32
  }
  func.func @transform_1(%arg0: i32) -> (i32, i32) {
    %c0_i32 = arith.constant 0 : i32
    %c0_i32_0 = arith.constant 0 : i32
    %c0_i32_1 = arith.constant 0 : i32
    return %c0_i32, %c0_i32_0 : i32, i32
  }
}

</mosaic_0001>

<bundles_post_ra>
// kernel: tpu_custom_call.1
= control target key start
LH: loop header
LB: loop body
LE: loop exit
PB: predicated region body
PF: predicated region fallthrough
CT: control target
= control target key end

     0   :  { %6 = vsyncpa [#allocation3], 0  ;;  %s149_s0 = inlined_call_operand.hbm [shape: f32[16,128], index: 0, kind: input, shape index: {}]   ;;  %s150_s1 = inlined_call_operand.hbm [shape: f32[1,128], index: 1, kind: output, shape index: {}]  }
   0x1   :  { %7 = vsyncpa [#allocation4], 0  ;;  %s110_s6 = smov [#allocation2]   ;;  %s62_s10 = scalar_lea.hbm %s149_s0, 256 }
   0x2   :  { %s13_s7 = sshll.u32 %s110_s6, 4  ;;  %p63_p0 = scmp.ne.s32.totalorder %s149_s0, %s62_s10  ;;  %s14_s7 = int_to_ptr.vmem [resolvable:$true] %s13_s7 }
   0x3   :  { %p66_p1 = scmp.lt.u32.totalorder %s62_s10, %s149_s0 }
   0x5   :  { %p68_p2 = pnand %p66_p1, %p63_p0 }
   0x7   :  { %71 = shalt.err (!%p68_p2)
}
   0x8   :  { %s72_s15 = scalar_lea.vmem %s14_s7, 256  ;;  %p77_p4 = scmp.lt.s32.totalorder %s14_s7, %s14_s7 }
   0x9   :  { %p73_p3 = scmp.ne.s32.totalorder %s14_s7, %s72_s15  ;;  %p78_p5 = scmp.lt.s32.totalorder %s72_s15, %s72_s15 }
   0xb   :  { %p79_p6 = por %p78_p5, %p77_p4 }
   0xd   :  { %p80_p7 = pnand %p79_p6, %p73_p3 }
   0xf   :  { %83 = shalt.err (!%p80_p7)
}
  0x10   :  { %s111_s16 = smov 128   ;;  %s112_s17 = smov 8  }
  0x11   :  { %19 = dma.hbm_to_vmem [thread:$0]  %s149_s0, 256, %s14_s7, [#allocation3], %s111_s16, %s111_s16, %s112_s17  }
  0x12   :  { %106 = dma.done.wait [#allocation3], 256  }
  0x13   :  { %107 = vsyncadd [#allocation3], 4294967040  ;;  %v113_v0 = vmov 0.0   ;;  %v29_v1 = vld [vmem:[#allocation2] sm:$0xff]  ;;  %v30_v2 = vld [vmem:[#allocation2 + $0x8] sm:$0xff]  ;;  %s114_s20 = smov [#allocation5]  }
  0x14   :  { %27 = vst [vmem:[#allocation5] sm:$0x1] %v113_v0  ;;  %v31_v3 = vand.u32 2147483647, %v29_v1  ;;  %v32_v4 = vand.u32 2147483647, %v30_v2 }
  0x15   :  { %s48_s21 = sshll.u32 %s114_s20, 4  ;;  %s49_s21 = int_to_ptr.vmem [resolvable:$true] %s48_s21 }
  0x16   :  { %v33_v5 = vadd.f32 %v32_v4, %v31_v3  ;;  %s84_s0 = scalar_lea.vmem %s49_s21, 16  ;;  %s88_s22 = scalar_lea.vmem %s49_s21, 32 }
  0x17   :  { %p85_p8 = scmp.ne.s32.totalorder %s49_s21, %s84_s0  ;;  %p89_p9 = scmp.lt.s32.totalorder %s49_s21, %s49_s21 }
  0x18   :  { %v34_v6 = vrot.slane %v33_v5, 4  ;;  %p90_p10 = scmp.lt.s32.totalorder %s88_s22, %s84_s0 }
  0x1a   :  { %v35_v7 = vadd.f32 %v34_v6, %v33_v5  ;;  %p91_p11 = por %p90_p10, %p89_p9 }
  0x1b   :  { %v28_v11 = vld [vmem:[#allocation5] sm:$0x1] }
  0x1c   :  { %v36_v8 = vrot.slane %v35_v7, 2  ;;  %p92_p12 = pnand %p91_p11, %p85_p8 }
  0x1e   :  { %v37_v9 = vadd.f32 %v36_v8, %v35_v7 }
  0x20   :  { %v38_v10 = vrot.slane %v37_v9, 1 }
  0x22   :  { %v39_v12 = vadd.f32 %v38_v10, %v37_v9 }
  0x24   :  { %v40_v13 = vadd.f32 %v39_v12, %v28_v11 }
  0x26   :  { %41 = vst [vmem:[#allocation5] sm:$0x1] %v40_v13 }
  0x27   :  { %95 = shalt.err (!%p92_p12)
}
  0x28   :  { %s96_s25 = scalar_lea.hbm %s150_s1, 16 }
  0x29   :  { %p97_p13 = scmp.ne.s32.totalorder %s150_s1, %s96_s25  ;;  %p100_p0 = scmp.lt.u32.totalorder %s96_s25, %s150_s1 }
  0x2b   :  { %p102_p1 = pnand %p100_p0, %p97_p13 }
  0x2d   :  { %105 = shalt.err (!%p102_p1)
}
  0x2e   :  { %51 = dma.vmem_to_hbm [thread:$0]  %s49_s21, 16, %s150_s1, [#allocation4]  }
  0x2f   :  { %108 = dma.done.wait [#allocation4], 16  }
  0x30   :  { %109 = vsyncadd [#allocation4], 4294967280 }
  0x31   :  { %55 = vsyncpa [#allocation3], 1 }
  0x32   :  { %56 = vsyncpa [#allocation4], 1 }

</bundles_post_ra>
